<compile_context>
chip_gen: v6e
topology: v6e:2x2x1
jax: 0.10.0
libtpu: 0.0.40
codegen_flags: <defaults>
</compile_context>

<pallas_src>
import jax
import jax.numpy as jnp
from jax.experimental import pallas as pl
from jax.experimental.pallas import tpu as pltpu

LN_EPS = 1e-5           # torch.nn.LayerNorm default
LEAKY_SLOPE = 0.01      # torch.nn.LeakyReLU default negative_slope


def _round_up(x, m):
    return ((x + m - 1) // m) * m


def _ln_leaky(h, gamma, beta):
    """LayerNorm (single-pass stats, gamma fused into scale) + LeakyReLU."""
    inv_w = 1.0 / h.shape[-1]
    mu = jnp.sum(h, axis=-1, keepdims=True) * inv_w
    var = jnp.sum(h * h, axis=-1, keepdims=True) * inv_w - mu * mu
    scale = gamma * jax.lax.rsqrt(var + LN_EPS)          # (rows, width)
    y = (h - mu) * scale + beta
    return jnp.where(y > 0, y, LEAKY_SLOPE * y)


def _critic_math(x, w1, w2, p1, p23, b3):
    """Forward math shared by the Pallas kernel body and the JAX reference.

    x  : (rows, i_pad) bf16 packed [state | action | zeros]
    w1 : (i_pad, 2n)   bf16  (zero rows for the padded features)
    w2 : (2n, n)       f32
    p1 : (3, 2n)       f32   rows = [b1, gamma1, beta1]
    p23: (3+o, n)      f32   rows = [b2, gamma2, beta2, W3^T]
    b3 : (1, o)        f32
    """
    # Linear(i, 2n): bf16 MXU matmul, f32 accumulation.
    h = jnp.dot(x, w1, preferred_element_type=jnp.float32) + p1[0:1, :]
    h = _ln_leaky(h, p1[1:2, :], p1[2:3, :])
    # Linear(2n, n): f32 matmul (MXU idle; avoids a full-width bf16 cast pass).
    h = jnp.dot(h, w2, preferred_element_type=jnp.float32) + p23[0:1, :]
    h = _ln_leaky(h, p23[1:2, :], p23[2:3, :])
    # Linear(n, o)
    w3t = p23[3:, :]                                     # (o, n)
    if w3t.shape[0] == 1:
        # o == 1: VPU multiply + lane reduction beats a 1-column MXU matmul.
        y = jnp.sum(h * w3t, axis=-1, keepdims=True)
    else:
        y = jax.lax.dot_general(h, w3t, (((1,), (1,)), ((), ())),
                                preferred_element_type=jnp.float32)
    return y + b3


def critic_kernel(x_ref, w1_ref, w2_ref, p1_ref, p23_ref, b3_ref, out_ref):
    out_ref[...] = _critic_math(
        x_ref[...], w1_ref[...], w2_ref[...],
        p1_ref[...], p23_ref[...], b3_ref[...]).astype(out_ref.dtype)


def _pack_inputs(state, action, i_pad, dtype):
    """Concat state/action, cast to the matmul dtype, zero-pad feat dim."""
    x = jnp.concatenate([state, action], axis=1).astype(dtype)
    if x.shape[1] != i_pad:
        x = jnp.pad(x, ((0, 0), (0, i_pad - x.shape[1])))
    return x


def critic_forward(state, action, params, *, tile_b=1024):
    """state: (B, s_dim), action: (B, a_dim). Returns (B, o) float32."""
    w1, w2, p1, p23, b3 = params
    B = state.shape[0]
    i_pad = w1.shape[0]
    o = b3.shape[1]

    x = _pack_inputs(state, action, i_pad, w1.dtype)

    # Batch tile: multiple of 16 (bf16 sublane packing).  Large tiles (1024+)
    # keep the BlockSpec pipeline near the HBM roofline in this overhead-bound
    # kernel; clamp down only when B itself is small (single-step grid).
    tile_b = max(16, min(tile_b, _round_up(B, 16)))
    # v7x megacore: if the batch is big enough that splitting does not hurt DMA
    # density (>= ~512 rows/tile), ensure >= 2 grid steps so the "parallel"
    # batch axis can shard across both TensorCores.  (No effect on v5e/v6e.)
    if B > 512 and _round_up(B, tile_b) // tile_b < 2:
        tile_b = _round_up((B + 1) // 2, 16)

    b_pad = _round_up(B, tile_b)
    if b_pad != B:
        x = jnp.pad(x, ((0, b_pad - B), (0, 0)))
    grid = (b_pad // tile_b,)

    def resident(arr):    # whole parameter, constant block -> VMEM-resident
        return pl.BlockSpec(arr.shape, lambda b: (0, 0))

    out = pl.pallas_call(
        critic_kernel,
        grid=grid,
        in_specs=[
            pl.BlockSpec((tile_b, i_pad), lambda b: (b, 0)),   # activations
            resident(w1), resident(w2),
            resident(p1), resident(p23), resident(b3),
        ],
        out_specs=pl.BlockSpec((tile_b, o), lambda b: (b, 0)),
        out_shape=jax.ShapeDtypeStruct((b_pad, o), jnp.float32),
        compiler_params=pltpu.CompilerParams(
            # "parallel" is safe on every generation; switch this axis to
            # pltpu.CORE_PARALLEL on v7x if a profile shows one TC idle.
            dimension_semantics=("parallel",)),
    )(x, w1, w2, p1, p23, b3)

    return out[:B]


def init_params(key, s_dim, a_dim, n, o, matmul_dtype=jnp.bfloat16):
    """Same shapes / init style as the torch module, packed for the kernel:
      w1 : (round_up(i,8), 2n) bf16  -- zero rows for the padded features
      w2 : (2n, n)             f32
      p1 : (3, 2n)             f32   -- rows [b1, gamma1, beta1]
      p23: (3+o, n)            f32   -- rows [b2, gamma2, beta2, W3^T]
      b3 : (1, o)              f32
    """
    i = s_dim + a_dim
    i_pad = _round_up(i, 8)
    ks = jax.random.split(key, 8)

    def lin(kw, kb, fan_in, fan_out):
        bound = fan_in ** -0.5
        w = jax.random.uniform(kw, (fan_in, fan_out), jnp.float32, -bound, bound)
        b = jax.random.uniform(kb, (fan_out,), jnp.float32, -bound, bound)
        return w, b

    w1, b1 = lin(ks[0], ks[1], i, 2 * n)
    w2, b2 = lin(ks[2], ks[3], 2 * n, n)
    w3, b3 = lin(ks[4], ks[5], n, o)
    g1 = 1.0 + 0.1 * jax.random.normal(ks[6], (2 * n,), jnp.float32)
    be1 = jnp.zeros((2 * n,), jnp.float32)
    g2 = 1.0 + 0.1 * jax.random.normal(ks[7], (n,), jnp.float32)
    be2 = jnp.zeros((n,), jnp.float32)

    w1_packed = jnp.zeros((i_pad, 2 * n), jnp.float32).at[:i].set(w1)
    p1 = jnp.stack([b1, g1, be1], axis=0)                        # (3, 2n)
    p23 = jnp.concatenate([jnp.stack([b2, g2, be2], axis=0), w3.T], axis=0)

    return (w1_packed.astype(matmul_dtype),
            w2.astype(jnp.float32),
            p1, p23,
            b3.reshape(1, o))


def critic_reference(state, action, params):
    """Pure-JAX mirror of the in-kernel math (identical packed params)."""
    w1, w2, p1, p23, b3 = params
    x = _pack_inputs(state, action, w1.shape[0], w1.dtype)
    return _critic_math(x, w1, w2, p1, p23, b3)


def critic_reference_torch_style(state, action, params):
    """Literal torch math (concat -> 3 Linears, two-pass LayerNorm), in f32,
    on the same (bf16-quantized) W1 / input values."""
    w1p, w2, p1, p23, b3 = params
    i = state.shape[1] + action.shape[1]
    cdt = w1p.dtype
    x = jnp.concatenate([state, action], 1).astype(cdt).astype(jnp.float32)
    w1 = w1p[:i].astype(jnp.float32)

    def ln(h, g, be):
        mu = jnp.mean(h, axis=-1, keepdims=True)
        var = jnp.mean((h - mu) ** 2, axis=-1, keepdims=True)
        return (h - mu) * jax.lax.rsqrt(var + LN_EPS) * g + be

    def lrelu(h):
        return jnp.where(h > 0, h, LEAKY_SLOPE * h)

    h = x @ w1 + p1[0:1]
    h = lrelu(ln(h, p1[1:2], p1[2:3]))
    h = h @ w2 + p23[0:1]
    h = lrelu(ln(h, p23[1:2], p23[2:3]))
    return h @ p23[3:].T + b3


if __name__ == "__main__":
    # i = state_dim + action_dim = 5 + 1 = 6, n = 32 neurons, o = 1
    S_DIM, A_DIM, N, O = 5, 1, 32, 1

    key = jax.random.PRNGKey(0)
    k_s, k_a, k_p, k_s2, k_a2 = jax.random.split(key, 5)
    params = init_params(k_p, S_DIM, A_DIM, N, O)

    # --- small batch (the DDPG usage in the spec): single-step grid ---
    B = 2
    state = jax.random.normal(k_s, (B, S_DIM), jnp.float32)
    action = jax.random.normal(k_a, (B, A_DIM), jnp.float32)
    out = jax.block_until_ready(critic_forward(state, action, params))
    ref = critic_reference(state, action, params)
    ref_t = critic_reference_torch_style(state, action, params)
    assert out.shape == (B, O)
    assert jnp.allclose(out, ref, atol=2e-3, rtol=2e-3), (out, ref)
    assert jnp.allclose(out, ref_t, atol=1e-2, rtol=1e-2), (out, ref_t)

    # --- medium batch: exercises batch padding inside a single tile ---
    B2 = 300
    state2 = jax.random.normal(k_s2, (B2, S_DIM), jnp.float32)
    action2 = jax.random.normal(k_a2, (B2, A_DIM), jnp.float32)
    out2 = jax.block_until_ready(critic_forward(state2, action2, params))
    ref2 = critic_reference(state2, action2, params)
    assert out2.shape == (B2, O)
    assert jnp.allclose(out2, ref2, atol=2e-3, rtol=2e-3)

    # --- large batch: multi-step grid (>= 2 tiles -> megacore-shardable) ---
    B3 = 3000
    k_s3, k_a3 = jax.random.split(k_s2)
    state3 = jax.random.normal(k_s3, (B3, S_DIM), jnp.float32)
    action3 = jax.random.normal(k_a3, (B3, A_DIM), jnp.float32)
    out3 = jax.block_until_ready(critic_forward(state3, action3, params))
    ref3 = critic_reference(state3, action3, params)
    assert out3.shape == (B3, O)
    assert jnp.allclose(out3, ref3, atol=2e-3, rtol=2e-3)

    print("KERNEL_OK")
</pallas_src>

<mosaic_0001>
module attributes {stable_mosaic.version = 11 : i64} {
  func.func @critic_kernel(%arg0: i32, %arg1: memref<16x8xbf16, #tpu.memory_space<vmem>>, %arg2: memref<8x64xbf16, #tpu.memory_space<vmem>>, %arg3: memref<64x32xf32, #tpu.memory_space<vmem>>, %arg4: memref<3x64xf32, #tpu.memory_space<vmem>>, %arg5: memref<4x32xf32, #tpu.memory_space<vmem>>, %arg6: memref<1x1xf32, #tpu.memory_space<vmem>>, %arg7: memref<16x1xf32, #tpu.memory_space<vmem>>) attributes {dimension_semantics = [#tpu.dimension_semantics<parallel>], iteration_bounds = array<i64: 1>, scalar_prefetch = 0 : i64, scratch_operands = 0 : i64, tpu.core_type = #tpu.core_type<tc>, window_params = [{transform_indices = @transform_0, window_bounds = array<i64: 16, 8>}, {pipeline_mode = #tpu.pipeline_mode<synchronous>, transform_indices = @transform_1, window_bounds = array<i64: 8, 64>}, {pipeline_mode = #tpu.pipeline_mode<synchronous>, transform_indices = @transform_2, window_bounds = array<i64: 64, 32>}, {pipeline_mode = #tpu.pipeline_mode<synchronous>, transform_indices = @transform_3, window_bounds = array<i64: 3, 64>}, {pipeline_mode = #tpu.pipeline_mode<synchronous>, transform_indices = @transform_4, window_bounds = array<i64: 4, 32>}, {pipeline_mode = #tpu.pipeline_mode<synchronous>, transform_indices = @transform_5, window_bounds = array<i64: 1, 1>}, {transform_indices = @transform_6, window_bounds = array<i64: 16, 1>}]} {
    %c0 = arith.constant 0 : index
    %c0_0 = arith.constant 0 : index
    %0 = vector.load %arg1[%c0, %c0_0] : memref<16x8xbf16, #tpu.memory_space<vmem>>, vector<16x8xbf16>
    %c0_1 = arith.constant 0 : index
    %c0_2 = arith.constant 0 : index
    %1 = vector.load %arg2[%c0_1, %c0_2] : memref<8x64xbf16, #tpu.memory_space<vmem>>, vector<8x64xbf16>
    %c0_3 = arith.constant 0 : index
    %c0_4 = arith.constant 0 : index
    %2 = vector.load %arg3[%c0_3, %c0_4] : memref<64x32xf32, #tpu.memory_space<vmem>>, vector<64x32xf32>
    %c0_5 = arith.constant 0 : index
    %c0_6 = arith.constant 0 : index
    %3 = vector.load %arg4[%c0_5, %c0_6] : memref<3x64xf32, #tpu.memory_space<vmem>>, vector<3x64xf32>
    %c0_7 = arith.constant 0 : index
    %c0_8 = arith.constant 0 : index
    %4 = vector.load %arg5[%c0_7, %c0_8] : memref<4x32xf32, #tpu.memory_space<vmem>>, vector<4x32xf32>
    %c0_9 = arith.constant 0 : index
    %c0_10 = arith.constant 0 : index
    %5 = vector.load %arg6[%c0_9, %c0_10] : memref<1x1xf32, #tpu.memory_space<vmem>>, vector<1x1xf32>
    %cst = arith.constant dense<0.000000e+00> : vector<16x64xf32>
    %6 = tpu.matmul %0, %1, %cst {dimension_numbers = #tpu.dot_dimension_numbers<[1], [0], [0], [1], [0, 0, 1, 1], [], []>} : vector<16x8xbf16>, vector<8x64xbf16>, vector<16x64xf32> -> vector<16x64xf32>
    %7 = vector.extract_strided_slice %3 {offsets = [0, 0], sizes = [1, 64], strides = [1, 1]} : vector<3x64xf32> to vector<1x64xf32>
    %8 = vector.broadcast %7 : vector<1x64xf32> to vector<16x64xf32>
    %9 = arith.addf %6, %8 : vector<16x64xf32>
    %10 = vector.extract_strided_slice %3 {offsets = [1, 0], sizes = [1, 64], strides = [1, 1]} : vector<3x64xf32> to vector<1x64xf32>
    %11 = vector.extract_strided_slice %3 {offsets = [2, 0], sizes = [1, 64], strides = [1, 1]} : vector<3x64xf32> to vector<1x64xf32>
    %cst_11 = arith.constant dense<0.000000e+00> : vector<16xf32>
    %12 = vector.multi_reduction <add>, %9, %cst_11 [1] : vector<16x64xf32> to vector<16xf32>
    %13 = vector.shape_cast %12 : vector<16xf32> to vector<16x1xf32>
    %cst_12 = arith.constant 1.562500e-02 : f32
    %14 = vector.broadcast %cst_12 : f32 to vector<16x1xf32>
    %15 = arith.mulf %13, %14 : vector<16x1xf32>
    %16 = arith.mulf %9, %9 : vector<16x64xf32>
    %cst_13 = arith.constant dense<0.000000e+00> : vector<16xf32>
    %17 = vector.multi_reduction <add>, %16, %cst_13 [1] : vector<16x64xf32> to vector<16xf32>
    %18 = vector.shape_cast %17 : vector<16xf32> to vector<16x1xf32>
    %cst_14 = arith.constant 1.562500e-02 : f32
    %19 = vector.broadcast %cst_14 : f32 to vector<16x1xf32>
    %20 = arith.mulf %18, %19 : vector<16x1xf32>
    %21 = arith.mulf %15, %15 : vector<16x1xf32>
    %22 = arith.subf %20, %21 : vector<16x1xf32>
    %cst_15 = arith.constant 9.99999974E-6 : f32
    %23 = vector.broadcast %cst_15 : f32 to vector<16x1xf32>
    %24 = arith.addf %22, %23 : vector<16x1xf32>
    %25 = math.rsqrt %24 : vector<16x1xf32>
    %26 = vector.broadcast %10 : vector<1x64xf32> to vector<16x64xf32>
    %27 = vector.broadcast %25 : vector<16x1xf32> to vector<16x64xf32>
    %28 = arith.mulf %26, %27 : vector<16x64xf32>
    %29 = vector.broadcast %15 : vector<16x1xf32> to vector<16x64xf32>
    %30 = arith.subf %9, %29 : vector<16x64xf32>
    %31 = arith.mulf %30, %28 : vector<16x64xf32>
    %32 = vector.broadcast %11 : vector<1x64xf32> to vector<16x64xf32>
    %33 = arith.addf %31, %32 : vector<16x64xf32>
    %cst_16 = arith.constant 0.000000e+00 : f32
    %34 = vector.broadcast %cst_16 : f32 to vector<16x64xf32>
    %35 = arith.cmpf ogt, %33, %34 : vector<16x64xf32>
    %cst_17 = arith.constant 0.00999999977 : f32
    %36 = vector.broadcast %cst_17 : f32 to vector<16x64xf32>
    %37 = arith.mulf %36, %33 : vector<16x64xf32>
    %38 = arith.select %35, %33, %37 : vector<16x64xi1>, vector<16x64xf32>
    %cst_18 = arith.constant dense<0.000000e+00> : vector<16x32xf32>
    %39 = tpu.matmul %38, %2, %cst_18 {dimension_numbers = #tpu.dot_dimension_numbers<[1], [0], [0], [1], [0, 0, 1, 1], [], []>} : vector<16x64xf32>, vector<64x32xf32>, vector<16x32xf32> -> vector<16x32xf32>
    %40 = vector.extract_strided_slice %4 {offsets = [0, 0], sizes = [1, 32], strides = [1, 1]} : vector<4x32xf32> to vector<1x32xf32>
    %41 = vector.broadcast %40 : vector<1x32xf32> to vector<16x32xf32>
    %42 = arith.addf %39, %41 : vector<16x32xf32>
    %43 = vector.extract_strided_slice %4 {offsets = [1, 0], sizes = [1, 32], strides = [1, 1]} : vector<4x32xf32> to vector<1x32xf32>
    %44 = vector.extract_strided_slice %4 {offsets = [2, 0], sizes = [1, 32], strides = [1, 1]} : vector<4x32xf32> to vector<1x32xf32>
    %cst_19 = arith.constant dense<0.000000e+00> : vector<16xf32>
    %45 = vector.multi_reduction <add>, %42, %cst_19 [1] : vector<16x32xf32> to vector<16xf32>
    %46 = vector.shape_cast %45 : vector<16xf32> to vector<16x1xf32>
    %cst_20 = arith.constant 3.125000e-02 : f32
    %47 = vector.broadcast %cst_20 : f32 to vector<16x1xf32>
    %48 = arith.mulf %46, %47 : vector<16x1xf32>
    %49 = arith.mulf %42, %42 : vector<16x32xf32>
    %cst_21 = arith.constant dense<0.000000e+00> : vector<16xf32>
    %50 = vector.multi_reduction <add>, %49, %cst_21 [1] : vector<16x32xf32> to vector<16xf32>
    %51 = vector.shape_cast %50 : vector<16xf32> to vector<16x1xf32>
    %cst_22 = arith.constant 3.125000e-02 : f32
    %52 = vector.broadcast %cst_22 : f32 to vector<16x1xf32>
    %53 = arith.mulf %51, %52 : vector<16x1xf32>
    %54 = arith.mulf %48, %48 : vector<16x1xf32>
    %55 = arith.subf %53, %54 : vector<16x1xf32>
    %cst_23 = arith.constant 9.99999974E-6 : f32
    %56 = vector.broadcast %cst_23 : f32 to vector<16x1xf32>
    %57 = arith.addf %55, %56 : vector<16x1xf32>
    %58 = math.rsqrt %57 : vector<16x1xf32>
    %59 = vector.broadcast %43 : vector<1x32xf32> to vector<16x32xf32>
    %60 = vector.broadcast %58 : vector<16x1xf32> to vector<16x32xf32>
    %61 = arith.mulf %59, %60 : vector<16x32xf32>
    %62 = vector.broadcast %48 : vector<16x1xf32> to vector<16x32xf32>
    %63 = arith.subf %42, %62 : vector<16x32xf32>
    %64 = arith.mulf %63, %61 : vector<16x32xf32>
    %65 = vector.broadcast %44 : vector<1x32xf32> to vector<16x32xf32>
    %66 = arith.addf %64, %65 : vector<16x32xf32>
    %cst_24 = arith.constant 0.000000e+00 : f32
    %67 = vector.broadcast %cst_24 : f32 to vector<16x32xf32>
    %68 = arith.cmpf ogt, %66, %67 : vector<16x32xf32>
    %cst_25 = arith.constant 0.00999999977 : f32
    %69 = vector.broadcast %cst_25 : f32 to vector<16x32xf32>
    %70 = arith.mulf %69, %66 : vector<16x32xf32>
    %71 = arith.select %68, %66, %70 : vector<16x32xi1>, vector<16x32xf32>
    %72 = vector.extract_strided_slice %4 {offsets = [3, 0], sizes = [1, 32], strides = [1, 1]} : vector<4x32xf32> to vector<1x32xf32>
    %73 = vector.broadcast %72 : vector<1x32xf32> to vector<16x32xf32>
    %74 = arith.mulf %71, %73 : vector<16x32xf32>
    %cst_26 = arith.constant dense<0.000000e+00> : vector<16xf32>
    %75 = vector.multi_reduction <add>, %74, %cst_26 [1] : vector<16x32xf32> to vector<16xf32>
    %76 = vector.shape_cast %75 : vector<16xf32> to vector<16x1xf32>
    %77 = vector.broadcast %5 : vector<1x1xf32> to vector<16x1xf32>
    %78 = arith.addf %76, %77 : vector<16x1xf32>
    %c0_27 = arith.constant 0 : index
    %c0_28 = arith.constant 0 : index
    %79 = vector.load %arg7[%c0_27, %c0_28] : memref<16x1xf32, #tpu.memory_space<vmem>>, vector<16x1xf32>
    tpu.vector_store %arg7[%c0_27, %c0_28], %78 {strides = array<i32>} : memref<16x1xf32, #tpu.memory_space<vmem>>, vector<16x1xf32>,
    return
  }
  func.func @transform_0(%arg0: i32) -> (i32, i32) {
    %c0_i32 = arith.constant 0 : i32
    %c0_i32_0 = arith.constant 0 : i32
    return %arg0, %c0_i32 : i32, i32
  }
  func.func @transform_1(%arg0: i32) -> (i32, i32) {
    %c0_i32 = arith.constant 0 : i32
    %c0_i32_0 = arith.constant 0 : i32
    %c0_i32_1 = arith.constant 0 : i32
    return %c0_i32, %c0_i32_0 : i32, i32
  }
  func.func @transform_2(%arg0: i32) -> (i32, i32) {
    %c0_i32 = arith.constant 0 : i32
    %c0_i32_0 = arith.constant 0 : i32
    %c0_i32_1 = arith.constant 0 : i32
    return %c0_i32, %c0_i32_0 : i32, i32
  }
  func.func @transform_3(%arg0: i32) -> (i32, i32) {
    %c0_i32 = arith.constant 0 : i32
    %c0_i32_0 = arith.constant 0 : i32
    %c0_i32_1 = arith.constant 0 : i32
    return %c0_i32, %c0_i32_0 : i32, i32
  }
  func.func @transform_4(%arg0: i32) -> (i32, i32) {
    %c0_i32 = arith.constant 0 : i32
    %c0_i32_0 = arith.constant 0 : i32
    %c0_i32_1 = arith.constant 0 : i32
    return %c0_i32, %c0_i32_0 : i32, i32
  }
  func.func @transform_5(%arg0: i32) -> (i32, i32) {
    %c0_i32 = arith.constant 0 : i32
    %c0_i32_0 = arith.constant 0 : i32
    %c0_i32_1 = arith.constant 0 : i32
    return %c0_i32, %c0_i32_0 : i32, i32
  }
  func.func @transform_6(%arg0: i32) -> (i32, i32) {
    %c0_i32 = arith.constant 0 : i32
    %c0_i32_0 = arith.constant 0 : i32
    return %arg0, %c0_i32 : i32, i32
  }
}

</mosaic_0001>

<bundles_post_ra>
// kernel: tpu_custom_call.1
= control target key start
LH: loop header
LB: loop body
LE: loop exit
PB: predicated region body
PF: predicated region fallthrough
CT: control target
= control target key end

     0   :  { %vm53_vm0 = vcmask 1043456   ;;  %v361_v0 = vmov 0.0   ;;  %vm362_vm1 = vmmov 0   ;;  %vm49_vm2 = vcmask 64512   ;;  %s482_s1 = inlined_call_operand.vmem [shape: bf16[8,64], index: 1, kind: input, shape index: {}]   ;;  %s483_s0 = inlined_call_operand.vmem [shape: bf16[16,8], index: 0, kind: input, shape index: {}]   ;;  %s484_s3 = inlined_call_operand.vmem [shape: f32[3,64], index: 3, kind: input, shape index: {}]   ;;  %s485_s2 = inlined_call_operand.vmem [shape: f32[64,32], index: 2, kind: input, shape index: {}]   ;;  %s486_s4 = inlined_call_operand.vmem [shape: f32[4,32], index: 4, kind: input, shape index: {}]   ;;  %s487_s5 = inlined_call_operand.<no memory space> [shape: f32[1,1], index: 5, kind: input, shape index: {}]   ;;  %s488_s6 = inlined_call_operand.vmem [shape: f32[16,1], index: 6, kind: output, shape index: {}]  }
   0x1   :  { %325 = vmatprep.subr.bf16.mxu0 %v361_v0  ;;  %v28_v1 = vld [vmem:[%s482_s1] sm:$0xf]  ;;  %327 = vmatprep.mubr.msk.bf16.mxu0 %vm362_vm1, %v361_v0  ;;  %v40_v4 = vlaneseq  ;;  %vm98_vm3 = vcmask 523264   ;;  %v36_v21 = vld [vmem:[%s485_s2 + $0x38] sm:$0xff]  ;;  %v35_v22 = vld [vmem:[%s485_s2 + $0x30] sm:$0xff]  ;;  %vm232_vm6 = vcmask 261120  }
   0x2   :  { %v55_v2 = vsel %vm53_vm0, %v28_v1, 0  ;;  %v352_v3 = vld [vmem:[%s483_s0] sm:$0xff]   ;;  %331 = vmatprep.subr.mxu1 %v36_v21  ;;  %v34_v23 = vld [vmem:[%s485_s2 + $0x28] sm:$0xff]  ;;  %v32_v25 = vld [vmem:[%s485_s2 + $0x18] sm:$0xff]  ;;  %vm301_vm9 = vcmask 7168  }
   0x3   :  { %326 = vmatpush3.bf16.msra.mxu0 %v55_v2  ;;  %v404_v5 = vshrl.u32 %v40_v4, 7  ;;  %v410_v7 = vld [vmem:[%s484_s3] sm:$0x7]  ;;  %332 = vmatpush3.msra.mxu1 %v36_v21  ;;  %v31_v26 = vld [vmem:[%s485_s2 + $0x10] sm:$0xff]  ;;  %v30_v27 = vld [vmem:[%s485_s2 + $0x8] sm:$0xff] }
   0x4   :  { %333 = vmatprep.subr.mxu1 %v35_v22  ;;  %v33_v24 = vld [vmem:[%s485_s2 + $0x20] sm:$0xff] }
   0x5   :  { %v42_v6 = vsub.s32 0, %v404_v5  ;;  %334 = vmatpush3.msra.mxu1 %v35_v22  ;;  %v29_v28 = vld [vmem:[%s485_s2] sm:$0xff]  ;;  %v127_v43 = vsub.s32 1, %v404_v5  ;;  %v137_v45 = vsub.s32 2, %v404_v5 }
   0x6   :  { %328 = vmatmul.mubr.msk.bf16.vlgmr.msra.gmra.mxu0 %vm49_vm2, %v352_v3  ;;  %335 = vmatprep.subr.mxu1 %v34_v23  ;;  %v38_v61 = vld [vmem:[%s486_s4] sm:$0xf] }
   0x7   :  { %v43_v8 = vrot.slane %v410_v7, %v42_v6  ;;  %336 = vmatpush3.msra.mxu1 %v34_v23  ;;  %v128_v44 = vrot.slane %v410_v7, %v127_v43  ;;  %v138_v49 = vrot.slane %v410_v7, %v137_v45  ;;  %v150_v62 = vrot.slane %v38_v61, %v42_v6 }
   0x8   :  { %337 = vmatprep.subr.mxu1 %v33_v24  ;;  %v11_v6 = vstv %s487_s5 }
   0x9   :  { %338 = vmatpush3.msra.mxu1 %v33_v24  ;;  %12 = vst [vmem:[#allocation2] sm:$0x1] %v11_v6 }
   0xa   :  { %339 = vmatprep.subr.mxu1 %v32_v25 }
   0xb   :  { %340 = vmatpush3.msra.mxu1 %v32_v25  ;;  %v262_v25 = vrot.slane %v38_v61, %v127_v43 }
   0xc   :  { %341 = vmatprep.subr.mxu1 %v31_v26 }
   0xd   :  { %342 = vmatpush3.msra.mxu1 %v31_v26 }
   0xe   :  { %343 = vmatprep.subr.mxu1 %v30_v27 }
   0xf   :  { %344 = vmatpush3.msra.mxu1 %v30_v27 }
  0x10   :  { %345 = vmatprep.subr.mxu1 %v29_v28 }
  0x11   :  { %346 = vmatpush3.msra.mxu1 %v29_v28 }
  0xc6   :  { %v91_v9 = vpop.f32.mrf.mxu0 }
  0xc7   :  { %v415_v10 = vadd.f32 %v91_v9, %v43_v8 }
  0xc8   :  { %v329_v11 = vpop.f32.mrf.mxu0 }
  0xc9   :  { %v99_v12 = vsel %vm98_vm3, %v415_v10, 0.0  ;;  %v107_v13 = vmul.f32 %v415_v10, %v415_v10 }
  0xca   :  { %100 = vadd.xlane.f32.xlu0 %v99_v12  ;;  %v94_v14 = vpop.f32.mrf.mxu0 }
  0xcb   :  { %v421_v15 = vadd.f32 %v94_v14, %v43_v8  ;;  %v109_v16 = vsel %vm98_vm3, %v107_v13, 0.0 }
  0xcc   :  { %110 = vadd.xlane.f32.xlu1 %v109_v16  ;;  %v330_v17 = vpop.f32.mrf.mxu0 }
  0xcd   :  { %v102_v18 = vsel %vm98_vm3, %v421_v15, 0.0  ;;  %v108_v19 = vmul.f32 %v421_v15, %v421_v15 }
  0xce   :  { %103 = vadd.xlane.f32.xlu0 %v102_v18 }
  0xcf   :  { %v112_v20 = vsel %vm98_vm3, %v108_v19, 0.0 }
  0xd0   :  { %113 = vadd.xlane.f32.xlu1 %v112_v20 }
 0x153   :  { %v101_v29 = vpop.xlane.xlu0 %100 }
 0x154   :  { %v105_v30 = vmul.f32 0.015625, %v101_v29  ;;  %v272_v29 = vrot.slane %v38_v61, %v137_v45 }
 0x155   :  { %v111_v31 = vpop.xlane.xlu1 %110 }
 0x156   :  { %v117_v32 = vmul.f32 %v105_v30, %v105_v30  ;;  %v115_v33 = vmul.f32 0.015625, %v111_v31  ;;  %v131_v47 = vsub.f32 %v415_v10, %v105_v30  ;;  %v283_v31 = vsub.s32 3, %v404_v5 }
 0x157   :  { %v104_v34 = vpop.xlane.xlu0 %103 }
 0x158   :  { %v119_v35 = vsub.f32 %v115_v33, %v117_v32  ;;  %v106_v36 = vmul.f32 0.015625, %v104_v34 }
 0x159   :  { %v114_v37 = vpop.xlane.xlu1 %113 }
 0x15a   :  { %v121_v38 = vadd.f32 1e-05, %v119_v35  ;;  %v118_v39 = vmul.f32 %v106_v36, %v106_v36  ;;  %v116_v40 = vmul.f32 0.015625, %v114_v37  ;;  %v132_v52 = vsub.f32 %v421_v15, %v106_v36 }
 0x15b   :  { %v284_v37 = vrot.slane %v38_v61, %v283_v31 }
 0x15c   :  { %353 = vrsqrt.f32 %v121_v38  ;;  %v120_v41 = vsub.f32 %v116_v40, %v118_v39 }
 0x15e   :  { %v122_v42 = vadd.f32 1e-05, %v120_v41 }
 0x160   :  { %355 = vrsqrt.f32 %v122_v42 }
 0x169   :  { %v354_v46 = vpop.eup %353 }
 0x16a   :  { %v129_v48 = vmul.f32 %v354_v46, %v128_v44  ;;  %v312_v46 = vld [vmem:[#allocation2] ss:$0 sm:$0xff] }
 0x16c   :  { %v133_v50 = vmul.f32 %v131_v47, %v129_v48 }
 0x16d   :  { %v356_v51 = vpop.eup %355 }
 0x16e   :  { %v139_v53 = vadd.f32 %v138_v49, %v133_v50  ;;  %v130_v54 = vmul.f32 %v356_v51, %v128_v44 }
 0x170   :  { %vm141_vm4 = vcmp.gt.f32.partialorder %v139_v53, 0.0  ;;  %v143_v55 = vmul.f32 0.01, %v139_v53  ;;  %v134_v56 = vmul.f32 %v132_v52, %v130_v54 }
 0x172   :  { %v145_v57 = vsel %vm141_vm4, %v139_v53, %v143_v55  ;;  %v140_v58 = vadd.f32 %v138_v49, %v134_v56 }
 0x173   :  { %347 = vmatprep.mubr.msk.f32.mxu1 %vm98_vm3, %v145_v57 }
 0x174   :  { %vm142_vm5 = vcmp.gt.f32.partialorder %v140_v58, 0.0  ;;  %v144_v59 = vmul.f32 0.01, %v140_v58 }
 0x176   :  { %v146_v60 = vsel %vm142_vm5, %v140_v58, %v144_v59 }
 0x177   :  { %348 = vmatmul.mubr.msk.f32.vlgmr.msra.gmra.mxu1 %vm98_vm3, %v146_v60 }
 0x237   :  { %v349_v63 = vpop.f32.mrf.mxu1 }
 0x238   :  { %v229_v0 = vadd.f32 %v349_v63, %v150_v62 }
 0x239   :  { %v223_v1 = vpop.f32.mrf.mxu1 }
 0x23a   :  { %v224_v2 = vadd.f32 %v223_v1, %v150_v62  ;;  %v236_v3 = vsel %vm232_vm6, %v229_v0, 0.0  ;;  %v242_v4 = vmul.f32 %v229_v0, %v229_v0 }
 0x23b   :  { %237 = vadd.xlane.f32.xlu1 %v236_v3 }
 0x23c   :  { %v233_v7 = vsel %vm232_vm6, %v224_v2, 0.0  ;;  %v241_v8 = vmul.f32 %v224_v2, %v224_v2  ;;  %v246_v9 = vsel %vm232_vm6, %v242_v4, 0.0 }
 0x23d   :  { %234 = vadd.xlane.f32.xlu0 %v233_v7 }
 0x23e   :  { %v243_v10 = vsel %vm232_vm6, %v241_v8, 0.0 }
 0x23f   :  { %247 = vadd.xlane.f32.xlu1 %v246_v9 }
 0x241   :  { %244 = vadd.xlane.f32.xlu0 %v243_v10 }
 0x2c4   :  { %v238_v11 = vpop.xlane.xlu1 %237 }
 0x2c5   :  { %v240_v12 = vmul.f32 0.03125, %v238_v11 }
 0x2c6   :  { %v235_v13 = vpop.xlane.xlu0 %234 }
 0x2c7   :  { %v239_v14 = vmul.f32 0.03125, %v235_v13  ;;  %v252_v16 = vmul.f32 %v240_v12, %v240_v12  ;;  %v266_v27 = vsub.f32 %v229_v0, %v240_v12 }
 0x2c8   :  { %v248_v15 = vpop.xlane.xlu1 %247 }
 0x2c9   :  { %v250_v17 = vmul.f32 0.03125, %v248_v15  ;;  %v251_v19 = vmul.f32 %v239_v14, %v239_v14  ;;  %v265_v32 = vsub.f32 %v224_v2, %v239_v14 }
 0x2ca   :  { %v245_v18 = vpop.xlane.xlu0 %244 }
 0x2cb   :  { %v254_v20 = vsub.f32 %v250_v17, %v252_v16  ;;  %v249_v21 = vmul.f32 0.03125, %v245_v18 }
 0x2cd   :  { %v256_v22 = vadd.f32 1e-05, %v254_v20  ;;  %v253_v23 = vsub.f32 %v249_v21, %v251_v19 }
 0x2cf   :  { %357 = vrsqrt.f32 %v256_v22  ;;  %v255_v24 = vadd.f32 1e-05, %v253_v23 }
 0x2d1   :  { %359 = vrsqrt.f32 %v255_v24 }
 0x2dc   :  { %v358_v26 = vpop.eup %357 }
 0x2dd   :  { %v264_v28 = vmul.f32 %v358_v26, %v262_v25 }
 0x2de   :  { %v360_v30 = vpop.eup %359 }
 0x2df   :  { %v268_v33 = vmul.f32 %v266_v27, %v264_v28  ;;  %v263_v34 = vmul.f32 %v360_v30, %v262_v25 }
 0x2e1   :  { %v274_v35 = vadd.f32 %v272_v29, %v268_v33  ;;  %v267_v36 = vmul.f32 %v265_v32, %v263_v34 }
 0x2e3   :  { %vm276_vm7 = vcmp.gt.f32.partialorder %v274_v35, 0.0  ;;  %v278_v38 = vmul.f32 0.01, %v274_v35  ;;  %v273_v39 = vadd.f32 %v272_v29, %v267_v36 }
 0x2e5   :  { %v280_v40 = vsel %vm276_vm7, %v274_v35, %v278_v38  ;;  %vm275_vm8 = vcmp.gt.f32.partialorder %v273_v39, 0.0  ;;  %v277_v41 = vmul.f32 0.01, %v273_v39 }
 0x2e6   :  { %v286_v42 = vmul.f32 %v284_v37, %v280_v40 }
 0x2e7   :  { %v279_v43 = vsel %vm275_vm8, %v273_v39, %v277_v41 }
 0x2e8   :  { %v290_v44 = vsel %vm232_vm6, %v286_v42, 0.0  ;;  %v285_v45 = vmul.f32 %v284_v37, %v279_v43 }
 0x2e9   :  { %291 = vadd.xlane.f32.xlu1 %v290_v44 }
 0x2ea   :  { %v287_v5 = vsel %vm232_vm6, %v285_v45, 0.0 }
 0x2eb   :  { %288 = vadd.xlane.f32.xlu0 %v287_v5 }
 0x372   :  { %v292_v47 = vpop.xlane.xlu1 %291 }
 0x373   :  { %v300_v48 = vadd.f32 %v312_v46, %v292_v47 }
 0x374   :  { %v289_v49 = vpop.xlane.xlu0 %288 }
 0x375   :  { %303 = vst.msk [vmem:[%s488_s6 + $0x8] sm:$0xff] %vm301_vm9, %v300_v48  ;;  %v299_v50 = vadd.f32 %v312_v46, %v289_v49 }
 0x377   :  { %302 = vst.msk [vmem:[%s488_s6] sm:$0xff] %vm301_vm9, %v299_v50 }

</bundles_post_ra>
